<compile_context>
chip_gen: v7x
topology: tpu7x:2x2x1
jax: 0.10.0
libtpu: 0.0.40
codegen_flags: <defaults>
</compile_context>

<pallas_src>
import math

import jax
import jax.numpy as jnp
from jax import lax
from jax.experimental import pallas as pl
from jax.experimental.pallas import tpu as pltpu

_LANE = 128
_SUBLANE = 8
_TARGET_CHUNK_ELEMS = 8 * _SUBLANE * _LANE  # ~8 f32 vregs of live data per chunk


def _round_up(x: int, n: int) -> int:
    return -(-x // n) * n


def _choose_2d(shape):
    """Free (bitcast, row-major) 2-D view (rows, cols) of a contiguous array."""
    m = 1
    for d in shape:
        m *= int(d)
    if m % _LANE == 0:
        return m // _LANE, _LANE            # perfect lane packing
    cols = 1
    for d in reversed(shape):               # collapse trailing dims (a divisor of m)
        cols *= int(d)
        if cols >= _LANE:
            break
    return m // cols, cols


def _plan_tiles(rows, cols, itemsizes, sub_mult, vmem_budget):
    """Pick (rows_tile, chunk_rows, num_tiles, masked)."""
    cols_pad = _round_up(cols, _LANE)       # VMEM lane padding of one row
    if rows <= sub_mult:
        return rows, rows, 1, False
    rows_down = (rows // sub_mult) * sub_mult
    chunk_rows = max(_TARGET_CHUNK_ELEMS // cols_pad, 1) // sub_mult * sub_mult
    chunk_rows = max(sub_mult, min(chunk_rows, rows_down))
    # Double-buffered (label + n_aux) input tiles must fit the budget.
    per_row_bytes = cols_pad * sum(itemsizes)
    rows_budget = max(chunk_rows, vmem_budget // (2 * per_row_bytes))
    rows_tile = max(chunk_rows, rows_budget // chunk_rows * chunk_rows)
    # Guarantee >= 2 grid tiles when there is enough work (v7x dual-TensorCore).
    half = _round_up(-(-rows // 2), chunk_rows)
    rows_tile = min(rows_tile, half)
    num_tiles = -(-rows // rows_tile)       # cdiv grid; last tile may be partial
    masked = (rows % rows_tile) != 0
    return rows_tile, chunk_rows, num_tiles, masked


def _make_kernel(n_aux, rows_tile, chunk_rows, cols, total_rows, masked):
    num_chunks = rows_tile // chunk_rows

    def kernel(w_ref, label_ref, *rest):
        o_refs = rest[:n_aux]               # n_aux aux-output tiles (native dtype)
        out_ref = rest[n_aux]               # (chunk_rows, cols) f32 per-tile partial

        tile_row0 = pl.program_id(0) * rows_tile
        if masked:
            row_ids = lax.broadcasted_iota(jnp.int32, (chunk_rows, cols), 0)

        def chunk_body(c, acc):
            r0 = c * chunk_rows
            if not isinstance(r0, int):
                r0 = pl.multiple_of(r0, chunk_rows)
            lbl = label_ref[pl.ds(r0, chunk_rows), :].astype(jnp.float32)
            if masked:
                valid = (tile_row0 + r0 + row_ids) < total_rows
            for i in range(n_aux):          # static unroll over aux heads (label reused)
                diff = o_refs[i][pl.ds(r0, chunk_rows), :].astype(jnp.float32) - lbl
                if masked:
                    diff = jnp.where(valid, diff, 0.0)   # garbage rows -> 0 (NaN-safe)
                acc = acc + w_ref[i] * (diff * diff)
            return acc

        acc0 = jnp.zeros((chunk_rows, cols), jnp.float32)
        if num_chunks == 1:
            acc = chunk_body(0, acc0)
        else:
            acc = lax.fori_loop(0, num_chunks, chunk_body, acc0,
                                unroll=math.gcd(num_chunks, 8))
        out_ref[...] = acc

    return kernel


def aux_loss(outputs, label, weight=None, vmem_budget_bytes=None):
    """Weighted sum of MSELoss(reduction='mean')(outputs[i], label). Scalar f32."""
    n_aux = len(outputs)
    assert n_aux >= 1
    for o in outputs:
        assert o.shape == label.shape, "aux outputs must match the label shape"
    if weight is None:
        weight = jnp.ones((n_aux,), dtype=jnp.float32)
    weight = jnp.asarray(weight, dtype=jnp.float32)

    m = 1
    for d in label.shape:
        m *= int(d)

    rows, cols = _choose_2d(label.shape)

    # Per-generation VMEM sizing (v5e/v6e 128 MiB physical, v7x 64 MiB).
    try:
        vmem_cap = int(pltpu.get_tpu_info().vmem_capacity_bytes)
    except Exception:
        vmem_cap = 128 * 1024 * 1024
    if vmem_budget_bytes is None:
        vmem_budget_bytes = min(vmem_cap // 4, 28 * 1024 * 1024)

    itemsizes = [label.dtype.itemsize] + [o.dtype.itemsize for o in outputs]
    # Native-dtype streaming: sub-32-bit dtypes pack more sublanes per vreg.
    sub_mult = _SUBLANE * max(1, 4 // min(itemsizes))
    rows_tile, chunk_rows, num_tiles, masked = _plan_tiles(
        rows, cols, itemsizes, sub_mult, vmem_budget_bytes)

    # Row-major reshapes are bitcasts: no extra HBM pass, no jnp.pad.
    label2d = label.reshape(rows, cols)
    outs2d = [o.reshape(rows, cols) for o in outputs]

    tile_spec = pl.BlockSpec((rows_tile, cols), lambda t: (t, 0))
    in_specs = [pl.BlockSpec(memory_space=pltpu.SMEM)]      # weights
    in_specs += [tile_spec] * (1 + n_aux)                   # label + each aux output

    cols_pad = _round_up(cols, _LANE)
    in_block_bytes = sum(rows_tile * cols_pad * s for s in itemsizes)
    out_block_bytes = chunk_rows * cols_pad * 4
    vmem_need = 2 * (in_block_bytes + out_block_bytes) + (4 << 20)
    vmem_limit = int(max(min(vmem_cap // 2, 64 << 20), vmem_need))

    bytes_accessed = (sum(int(x.size) * x.dtype.itemsize for x in [label2d] + outs2d)
                      + num_tiles * chunk_rows * cols * 4 + n_aux * 4)
    cost = pl.CostEstimate(flops=4 * n_aux * m, transcendentals=0,
                           bytes_accessed=bytes_accessed)

    partials = pl.pallas_call(
        _make_kernel(n_aux, rows_tile, chunk_rows, cols, rows, masked),
        out_shape=jax.ShapeDtypeStruct((num_tiles, chunk_rows, cols), jnp.float32),
        grid_spec=pltpu.PrefetchScalarGridSpec(
            num_scalar_prefetch=0,
            grid=(num_tiles,),
            in_specs=in_specs,
            out_specs=pl.BlockSpec((pl.Squeezed(), chunk_rows, cols),
                                   lambda t: (t, 0, 0)),
        ),
        compiler_params=pltpu.CompilerParams(
            dimension_semantics=("parallel",),   # independent tiles -> 2-TC split on v7x
            vmem_limit_bytes=vmem_limit),
        cost_estimate=cost,
    )(weight, label2d, *outs2d)

    # Tiny final reduction + single mean divide (exact MSELoss 'mean' semantics).
    return jnp.sum(partials) / jnp.float32(m)


def _reference(outputs, label, weight):
    return jnp.sum(jnp.stack(
        [w * jnp.mean((o.astype(jnp.float32) - label.astype(jnp.float32)) ** 2)
         for o, w in zip(outputs, weight)]))


if __name__ == "__main__":
    n_aux = 3
    weight = jnp.array([1.0, 0.5, 0.25], dtype=jnp.float32)

    def check(shape, dtype, seed):
        keys = jax.random.split(jax.random.PRNGKey(seed), n_aux + 1)
        outs = [jax.random.normal(keys[i], shape, dtype=jnp.float32).astype(dtype)
                for i in range(n_aux)]
        lbl = jax.random.normal(keys[-1], shape, dtype=jnp.float32).astype(dtype)
        got = aux_loss(outs, lbl, weight)
        jax.block_until_ready(got)
        want = _reference(outs, lbl, weight)
        assert jnp.allclose(got, want, rtol=1e-5, atol=1e-5), (shape, dtype, got, want)

    # 1) Aligned NCHW activations (single-tile fast path).
    check((2, 4, 16, 16), jnp.float32, 0)
    # 2) Element count not a multiple of 128: trailing-dim collapse view, no jnp.pad.
    check((2, 4, 15, 15), jnp.float32, 1)
    # 3) Multi-tile grid with a masked partial last tile (in-kernel row masking).
    check((2, 4, 20, 16), jnp.float32, 2)
    # 4) Larger input: multi-chunk in-kernel fori_loop + >= 2-tile grid.
    check((2, 16, 64, 64), jnp.float32, 3)
    # 5) bf16 inputs streamed in native dtype (16-row sublane packing).
    check((2, 4, 16, 16), jnp.bfloat16, 4)

    print("KERNEL_OK")
</pallas_src>

<mosaic_0001>
module attributes {stable_mosaic.version = 11 : i64} {
  func.func @kernel(%arg0: i32, %arg1: memref<3xf32, #tpu.memory_space<smem>>, %arg2: memref<16x128xf32, #tpu.memory_space<vmem>>, %arg3: memref<16x128xf32, #tpu.memory_space<vmem>>, %arg4: memref<16x128xf32, #tpu.memory_space<vmem>>, %arg5: memref<16x128xf32, #tpu.memory_space<vmem>>, %arg6: memref<1x16x128xf32, #tpu.memory_space<vmem>>) attributes {dimension_semantics = [#tpu.dimension_semantics<parallel>], iteration_bounds = array<i64: 1>, scalar_prefetch = 0 : i64, scratch_operands = 0 : i64, tpu.core_type = #tpu.core_type<tc>, window_params = [{transform_indices = @transform_0, window_bounds = array<i64: 3>}, {transform_indices = @transform_1, window_bounds = array<i64: 16, 128>}, {transform_indices = @transform_2, window_bounds = array<i64: 16, 128>}, {transform_indices = @transform_3, window_bounds = array<i64: 16, 128>}, {transform_indices = @transform_4, window_bounds = array<i64: 16, 128>}, {transform_indices = @transform_5, window_bounds = array<i64: 1, 16, 128>}]} {
    %cst = arith.constant 0.000000e+00 : f32
    %0 = vector.broadcast %cst : f32 to vector<16x128xf32>
    %c0 = arith.constant 0 : index
    %c0_0 = arith.constant 0 : index
    %1 = vector.load %arg2[%c0, %c0_0] : memref<16x128xf32, #tpu.memory_space<vmem>>, vector<16x128xf32>
    %c0_1 = arith.constant 0 : index
    %c0_2 = arith.constant 0 : index
    %2 = vector.load %arg3[%c0_1, %c0_2] : memref<16x128xf32, #tpu.memory_space<vmem>>, vector<16x128xf32>
    %3 = arith.subf %2, %1 : vector<16x128xf32>
    %c0_3 = arith.constant 0 : index
    %4 = memref.load %arg1[%c0_3] : memref<3xf32, #tpu.memory_space<smem>>
    %5 = arith.mulf %3, %3 : vector<16x128xf32>
    %6 = vector.broadcast %4 : f32 to vector<16x128xf32>
    %7 = arith.mulf %6, %5 : vector<16x128xf32>
    %8 = arith.addf %0, %7 : vector<16x128xf32>
    %c0_4 = arith.constant 0 : index
    %c0_5 = arith.constant 0 : index
    %9 = vector.load %arg4[%c0_4, %c0_5] : memref<16x128xf32, #tpu.memory_space<vmem>>, vector<16x128xf32>
    %10 = arith.subf %9, %1 : vector<16x128xf32>
    %c1 = arith.constant 1 : index
    %11 = memref.load %arg1[%c1] : memref<3xf32, #tpu.memory_space<smem>>
    %12 = arith.mulf %10, %10 : vector<16x128xf32>
    %13 = vector.broadcast %11 : f32 to vector<16x128xf32>
    %14 = arith.mulf %13, %12 : vector<16x128xf32>
    %15 = arith.addf %8, %14 : vector<16x128xf32>
    %c0_6 = arith.constant 0 : index
    %c0_7 = arith.constant 0 : index
    %16 = vector.load %arg5[%c0_6, %c0_7] : memref<16x128xf32, #tpu.memory_space<vmem>>, vector<16x128xf32>
    %17 = arith.subf %16, %1 : vector<16x128xf32>
    %c2 = arith.constant 2 : index
    %18 = memref.load %arg1[%c2] : memref<3xf32, #tpu.memory_space<smem>>
    %19 = arith.mulf %17, %17 : vector<16x128xf32>
    %20 = vector.broadcast %18 : f32 to vector<16x128xf32>
    %21 = arith.mulf %20, %19 : vector<16x128xf32>
    %22 = arith.addf %15, %21 : vector<16x128xf32>
    %c0_8 = arith.constant 0 : index
    %c0_9 = arith.constant 0 : index
    %c0_10 = arith.constant 0 : index
    %23 = vector.load %arg6[%c0_8, %c0_9, %c0_10] : memref<1x16x128xf32, #tpu.memory_space<vmem>>, vector<1x16x128xf32>
    %24 = vector.shape_cast %23 : vector<1x16x128xf32> to vector<16x128xf32>
    %25 = vector.shape_cast %22 : vector<16x128xf32> to vector<1x16x128xf32>
    tpu.vector_store %arg6[%c0_8, %c0_9, %c0_10], %25 {strides = array<i32>} : memref<1x16x128xf32, #tpu.memory_space<vmem>>, vector<1x16x128xf32>,
    return
  }
  func.func @transform_0(%arg0: i32) -> i32 {
    %c0_i32 = arith.constant 0 : i32
    %c0_i32_0 = arith.constant 0 : i32
    return %c0_i32 : i32
  }
  func.func @transform_1(%arg0: i32) -> (i32, i32) {
    %c0_i32 = arith.constant 0 : i32
    %c0_i32_0 = arith.constant 0 : i32
    return %arg0, %c0_i32 : i32, i32
  }
  func.func @transform_2(%arg0: i32) -> (i32, i32) {
    %c0_i32 = arith.constant 0 : i32
    %c0_i32_0 = arith.constant 0 : i32
    return %arg0, %c0_i32 : i32, i32
  }
  func.func @transform_3(%arg0: i32) -> (i32, i32) {
    %c0_i32 = arith.constant 0 : i32
    %c0_i32_0 = arith.constant 0 : i32
    return %arg0, %c0_i32 : i32, i32
  }
  func.func @transform_4(%arg0: i32) -> (i32, i32) {
    %c0_i32 = arith.constant 0 : i32
    %c0_i32_0 = arith.constant 0 : i32
    return %arg0, %c0_i32 : i32, i32
  }
  func.func @transform_5(%arg0: i32) -> (i32, i32, i32) {
    %c0_i32 = arith.constant 0 : i32
    %c0_i32_0 = arith.constant 0 : i32
    %c0_i32_1 = arith.constant 0 : i32
    return %arg0, %c0_i32, %c0_i32_0 : i32, i32, i32
  }
}

</mosaic_0001>

<bundles_post_ra>
// kernel: tpu_custom_call.1
= control target key start
LH: loop header
LB: loop body
LE: loop exit
PB: predicated region body
PF: predicated region fallthrough
CT: control target
= control target key end

     0   :  { %10 = vsyncpa [#allocation5], 0  ;;  %s412_s0 = inlined_call_operand.hbm [shape: f32[3], index: 0, kind: input, shape index: {}]   ;;  %s413_s1 = inlined_call_operand.hbm [shape: f32[16,128], index: 1, kind: input, shape index: {}]   ;;  %s414_s2 = inlined_call_operand.hbm [shape: f32[16,128], index: 2, kind: input, shape index: {}]   ;;  %s415_s3 = inlined_call_operand.hbm [shape: f32[16,128], index: 3, kind: input, shape index: {}]   ;;  %s416_s4 = inlined_call_operand.hbm [shape: f32[16,128], index: 4, kind: input, shape index: {}]   ;;  %s417_s5 = inlined_call_operand.hbm [shape: f32[1,16,128], index: 5, kind: output, shape index: {}]  }
   0x1   :  { %11 = vsyncpa [#allocation3], 0 }
   0x2   :  { %12 = vsyncpa [#allocation8], 0 }
   0x3   :  { %13 = vsyncpa [#allocation11], 0 }
   0x4   :  { %14 = vsyncpa [#allocation4], 0  ;;  %s287_s18 = smov [#allocation7]   ;;  %s288_s20 = smov [#allocation6]  }
   0x5   :  { %s40_s19 = sshll.u32 %s287_s18, 4  ;;  %s28_s21 = sshll.u32 %s288_s20, 4  ;;  %s41_s19 = int_to_ptr.vmem [resolvable:$true] %s40_s19  ;;  %s29_s21 = int_to_ptr.vmem [resolvable:$true] %s28_s21 }
   0x6   :  { %s157_s24 = scalar_lea.hbm %s414_s2, 256 }
   0x7   :  { %p158_p0 = scmp.ne.s32.totalorder %s414_s2, %s157_s24  ;;  %p161_p1 = scmp.lt.u32.totalorder %s157_s24, %s414_s2 }
   0x9   :  { %p163_p2 = pnand %p161_p1, %p158_p0 }
   0xb   :  { %166 = shalt.err (!%p163_p2)
}
   0xc   :  { %s167_s29 = scalar_lea.vmem %s41_s19, 256  ;;  %p172_p4 = scmp.lt.s32.totalorder %s41_s19, %s41_s19 }
   0xd   :  { %p168_p3 = scmp.ne.s32.totalorder %s41_s19, %s167_s29  ;;  %p173_p5 = scmp.lt.s32.totalorder %s167_s29, %s167_s29 }
   0xf   :  { %p174_p6 = por %p173_p5, %p172_p4 }
  0x11   :  { %p175_p7 = pnand %p174_p6, %p168_p3 }
  0x13   :  { %178 = shalt.err (!%p175_p7)
}
  0x14   :  { %s289_s30 = smov 128   ;;  %s290_s6 = smov 8  }
  0x15   :  { %46 = dma.hbm_to_vmem [thread:$0]  %s414_s2, 256, %s41_s19, [#allocation8], %s289_s30, %s289_s30, %s290_s6  }
  0x16   :  { %s179_s11 = scalar_lea.hbm %s412_s0, 16 }
  0x17   :  { %p180_p8 = scmp.ne.s32.totalorder %s412_s0, %s179_s11  ;;  %p183_p9 = scmp.lt.u32.totalorder %s179_s11, %s412_s0 }
  0x19   :  { %p185_p10 = pnand %p183_p9, %p180_p8 }
  0x1b   :  { %188 = shalt.err (!%p185_p10)
}
  0x1c   :  { %s291_s16 = smov [#allocation2]   ;;  %s189_s20 = scalar_lea.hbm %s413_s1, 256 }
  0x1d   :  { %22 = dma.hbm_to_smem %s412_s0, 16, %s291_s16, [#allocation5]  }
  0x1e   :  { %p190_p11 = scmp.ne.s32.totalorder %s413_s1, %s189_s20  ;;  %p193_p12 = scmp.lt.u32.totalorder %s189_s20, %s413_s1 }
  0x20   :  { %p195_p13 = pnand %p193_p12, %p190_p11 }
  0x22   :  { %198 = shalt.err (!%p195_p13)
}
  0x23   :  { %s199_s26 = scalar_lea.vmem %s29_s21, 256  ;;  %p204_p1 = scmp.lt.s32.totalorder %s29_s21, %s29_s21 }
  0x24   :  { %p200_p0 = scmp.ne.s32.totalorder %s29_s21, %s199_s26  ;;  %p205_p2 = scmp.lt.s32.totalorder %s199_s26, %s199_s26 }
  0x26   :  { %p206_p3 = por %p205_p2, %p204_p1 }
  0x28   :  { %p207_p4 = pnand %p206_p3, %p200_p0 }
  0x2a   :  { %210 = shalt.err (!%p207_p4)
}
  0x2b   :  { %34 = dma.hbm_to_vmem [thread:$0]  %s413_s1, 256, %s29_s21, [#allocation3], %s289_s30, %s289_s30, %s290_s6  }
  0x2c   :  { %s292_s28 = smov [#allocation9]   ;;  %s293_s7 = smov [#allocation10]  }
  0x2d   :  { %s52_s29 = sshll.u32 %s292_s28, 4  ;;  %s64_s8 = sshll.u32 %s293_s7, 4  ;;  %s53_s29 = int_to_ptr.vmem [resolvable:$true] %s52_s29  ;;  %s65_s8 = int_to_ptr.vmem [resolvable:$true] %s64_s8 }
  0x2e   :  { %s211_s11 = scalar_lea.hbm %s415_s3, 256 }
  0x2f   :  { %p212_p5 = scmp.ne.s32.totalorder %s415_s3, %s211_s11  ;;  %p215_p6 = scmp.lt.u32.totalorder %s211_s11, %s415_s3 }
  0x31   :  { %p217_p7 = pnand %p215_p6, %p212_p5 }
  0x33   :  { %220 = shalt.err (!%p217_p7)
}
  0x34   :  { %s221_s1 = scalar_lea.vmem %s53_s29, 256  ;;  %p226_p9 = scmp.lt.s32.totalorder %s53_s29, %s53_s29 }
  0x35   :  { %p222_p8 = scmp.ne.s32.totalorder %s53_s29, %s221_s1  ;;  %p227_p10 = scmp.lt.s32.totalorder %s221_s1, %s221_s1 }
  0x37   :  { %p228_p11 = por %p227_p10, %p226_p9 }
  0x39   :  { %p229_p12 = pnand %p228_p11, %p222_p8 }
  0x3b   :  { %232 = shalt.err (!%p229_p12)
}
  0x3c   :  { %58 = dma.hbm_to_vmem [thread:$0]  %s415_s3, 256, %s53_s29, [#allocation8], %s289_s30, %s289_s30, %s290_s6  }
  0x3d   :  { %s233_s2 = scalar_lea.hbm %s416_s4, 256 }
  0x3e   :  { %p234_p13 = scmp.ne.s32.totalorder %s416_s4, %s233_s2  ;;  %p237_p0 = scmp.lt.u32.totalorder %s233_s2, %s416_s4 }
  0x40   :  { %p239_p1 = pnand %p237_p0, %p234_p13 }
  0x42   :  { %242 = shalt.err (!%p239_p1)
}
  0x43   :  { %s243_s24 = scalar_lea.vmem %s65_s8, 256  ;;  %p248_p3 = scmp.lt.s32.totalorder %s65_s8, %s65_s8 }
  0x44   :  { %p244_p2 = scmp.ne.s32.totalorder %s65_s8, %s243_s24  ;;  %p249_p4 = scmp.lt.s32.totalorder %s243_s24, %s243_s24 }
  0x46   :  { %p250_p5 = por %p249_p4, %p248_p3 }
  0x48   :  { %p251_p6 = pnand %p250_p5, %p244_p2 }
  0x4a   :  { %254 = shalt.err (!%p251_p6)
}
  0x4b   :  { %70 = dma.hbm_to_vmem [thread:$0]  %s416_s4, 256, %s65_s8, [#allocation11], %s289_s30, %s289_s30, %s290_s6  }
  0x4c   :  { %277 = dma.done.wait [#allocation5], 16  }
  0x4d   :  { %278 = vsyncadd [#allocation5], 4294967280 }
  0x4e   :  { %279 = dma.done.wait [#allocation3], 256  }
  0x4f   :  { %280 = vsyncadd [#allocation3], 4294967040 }
  0x50   :  { %281 = dma.done.wait [#allocation8], 512  }
  0x51   :  { %282 = vsyncadd [#allocation8], 4294966784 }
  0x52   :  { %283 = dma.done.wait [#allocation11], 256  }
  0x53   :  { %284 = vsyncadd [#allocation11], 4294967040 }
  0x54   :  { %86 = sfence }
  0x55   :  { %v87_v0 = vld [vmem:[#allocation6] sm:$0xff]  ;;  %v89_v1 = vld [vmem:[#allocation7] sm:$0xff]  ;;  %s93_s26 = sld [smem:[#allocation2]]  ;;  %s147_s0 = sld [smem:[#allocation2 + $0x1]]  ;;  %v88_v6 = vld [vmem:[#allocation6 + $0x8] sm:$0xff] }
  0x56   :  { %v101_v2 = vld [vmem:[#allocation9] sm:$0xff]  ;;  %v91_v3 = vsub.f32 %v89_v1, %v87_v0  ;;  %v113_v5 = vld [vmem:[#allocation10] sm:$0xff]  ;;  %s148_s27 = sld [smem:[#allocation2 + $0x2]]  ;;  %v90_v8 = vld [vmem:[#allocation7 + $0x8] sm:$0xff]  ;;  %s294_s4 = smov [#allocation12]  }
  0x57   :  { %v103_v4 = vsub.f32 %v101_v2, %v87_v0  ;;  %v115_v7 = vsub.f32 %v113_v5, %v87_v0  ;;  %v102_v9 = vld [vmem:[#allocation9 + $0x8] sm:$0xff]  ;;  %v114_v10 = vld [vmem:[#allocation10 + $0x8] sm:$0xff]  ;;  %v92_v12 = vsub.f32 %v90_v8, %v88_v6  ;;  %s132_s28 = sshll.u32 %s294_s4, 4  ;;  %s133_s28 = int_to_ptr.vmem [resolvable:$true] %s132_s28 }
  0x58   :  { %v94_v11 = vmul.f32 %v91_v3, %v91_v3  ;;  %v104_v13 = vsub.f32 %v102_v9, %v88_v6  ;;  %v116_v16 = vsub.f32 %v114_v10, %v88_v6  ;;  %s255_s29 = scalar_lea.vmem %s133_s28, 256  ;;  %p260_p8 = scmp.lt.s32.totalorder %s133_s28, %s133_s28 }
  0x59   :  { %v106_v14 = vmul.f32 %v103_v4, %v103_v4  ;;  %v118_v15 = vmul.f32 %v115_v7, %v115_v7  ;;  %v95_v17 = vmul.f32 %v92_v12, %v92_v12  ;;  %p256_p7 = scmp.ne.s32.totalorder %s133_s28, %s255_s29  ;;  %p261_p9 = scmp.lt.s32.totalorder %s255_s29, %s255_s29 }
  0x5a   :  { %v107_v18 = vmul.f32 %v104_v13, %v104_v13  ;;  %v119_v20 = vmul.f32 %v116_v16, %v116_v16 }
  0x5b   :  { %v96_v19 = vstv %s93_s26  ;;  %v108_v22 = vstv %s147_s0  ;;  %p262_p10 = por %p261_p9, %p260_p8 }
  0x5c   :  { %v97_v21 = vmul.f32 %v96_v19, %v94_v11  ;;  %v120_v23 = vstv %s148_s27  ;;  %v98_v24 = vmul.f32 %v96_v19, %v95_v17  ;;  %v109_v25 = vmul.f32 %v108_v22, %v106_v14 }
  0x5d   :  { %v121_v26 = vmul.f32 %v120_v23, %v118_v15  ;;  %v110_v27 = vmul.f32 %v108_v22, %v107_v18  ;;  %v122_v28 = vmul.f32 %v120_v23, %v119_v20  ;;  %p263_p11 = pnand %p262_p10, %p256_p7 }
  0x5e   :  { %v111_v29 = vadd.f32 %v109_v25, %v97_v21 }
  0x5f   :  { %v112_v30 = vadd.f32 %v110_v27, %v98_v24 }
  0x60   :  { %v123_v31 = vadd.f32 %v121_v26, %v111_v29 }
  0x61   :  { %v124_v32 = vadd.f32 %v122_v28, %v112_v30 }
  0x62   :  { %125 = vst [vmem:[#allocation12] sm:$0xff] %v123_v31 }
  0x63   :  { %126 = vst [vmem:[#allocation12 + $0x8] sm:$0xff] %v124_v32 }
  0x64   :  { %266 = shalt.err (!%p263_p11)
}
  0x65   :  { %s267_s9 = scalar_lea.hbm %s417_s5, 256 }
  0x66   :  { %p268_p12 = scmp.ne.s32.totalorder %s417_s5, %s267_s9  ;;  %p271_p13 = scmp.lt.u32.totalorder %s267_s9, %s417_s5 }
  0x68   :  { %p273_p0 = pnand %p271_p13, %p268_p12 }
  0x6a   :  { %276 = shalt.err (!%p273_p0)
}
  0x6b   :  { %138 = dma.vmem_to_hbm [thread:$0]  %s133_s28, 256, %s417_s5, [#allocation4], %s289_s30, %s289_s30, %s290_s6  }
  0x6c   :  { %285 = dma.done.wait [#allocation4], 256  }
  0x6d   :  { %286 = vsyncadd [#allocation4], 4294967040 }
  0x6e   :  { %142 = vsyncpa [#allocation3], 1 }
  0x6f   :  { %143 = vsyncpa [#allocation8], 1 }
  0x70   :  { %144 = vsyncpa [#allocation11], 1 }
  0x71   :  { %145 = vsyncpa [#allocation4], 1 }
  0x72   :  { %146 = vsyncpa [#allocation5], 1 }

</bundles_post_ra>
